<compile_context>
chip_gen: v5e
topology: v5e:2x2
jax: 0.10.0
libtpu: 0.0.40
codegen_flags: <defaults>
</compile_context>

<pallas_src>
import functools

import jax
import jax.numpy as jnp
from jax.experimental import pallas as pl
from jax.experimental.pallas import tpu as pltpu


def _cdiv(a: int, b: int) -> int:
    return -(-a // b)


def _round_up(n: int, m: int) -> int:
    return ((n + m - 1) // m) * m


def _pad2d(a, rows: int, cols: int):
    pr, pc = rows - a.shape[0], cols - a.shape[1]
    if pr == 0 and pc == 0:
        return a
    return jnp.pad(a, ((0, pr), (0, pc)))


# Physical VMEM capacity (per TensorCore). Queried once at import; fall back
# to the most conservative generation (v7x: 64 MiB) if the query is
# unavailable.
try:
    _VMEM_CAP = int(pltpu.get_tpu_info().vmem_capacity_bytes)
except Exception:  # pragma: no cover
    _VMEM_CAP = 64 * 1024 * 1024


def _mlp_kernel(x_ref, w1_ref, b1_ref, w2_ref, b2_ref, w3_ref, b3_ref, o_ref):
    """One batch tile of the fused MLP.

    x_ref:  (TB, d_in_p)   f32 (cast to MXU dtype on the VPU, hidden under MXU)
    w*_ref: (fan_in, fan_out) compute dtype (bf16 or f32)
    b*_ref: (1, fan_out)   f32
    o_ref:  (TB, d_out_p)  f32 (lane-dense store)
    """
    x = x_ref[...].astype(w1_ref.dtype)

    # fc1 + ReLU (MXU with f32 accumulation; epilogue in f32 on the VPU).
    out1 = jnp.dot(x, w1_ref[...], preferred_element_type=jnp.float32)
    out1 = jnp.maximum(out1 + b1_ref[...], 0.0)

    # fc2 + ReLU, then residual out2 += out1 (out1 kept live in f32).
    out2 = jnp.dot(out1.astype(w2_ref.dtype), w2_ref[...],
                   preferred_element_type=jnp.float32)
    out2 = jnp.maximum(out2 + b2_ref[...], 0.0) + out1

    # fc3 (no activation).
    out3 = jnp.dot(out2.astype(w3_ref.dtype), w3_ref[...],
                   preferred_element_type=jnp.float32)
    o_ref[...] = out3 + b3_ref[...]


def prepare_params(params, *, use_bf16: bool = True):
    """Pad (lane-align) and cast weights/biases ONCE, outside the call path.

    params: (w1, b1, w2, b2, w3, b3), weights stored as (fan_in, fan_out)
    (i.e. PyTorch W.T), biases as (1, fan_out).
    Returns (padded_params, d_out) where d_out is the logical output width.
    """
    w1, b1, w2, b2, w3, b3 = params
    d_in, h1 = w1.shape
    h1b, h2 = w2.shape
    h2b, d_out = w3.shape
    assert h1 == h1b and h2 == h2b
    assert h1 == h2, "residual out2 += out1 requires hidden_dim1 == hidden_dim2"

    d_in_p = _round_up(d_in, 128)
    h_p = _round_up(h1, 128)
    d_out_p = _round_up(d_out, 128)
    cd = jnp.bfloat16 if use_bf16 else jnp.float32

    # Zero pads keep the math exact: padded K columns of x meet zero weight
    # rows, padded hidden lanes stay exactly 0 through ReLU + residual, padded
    # output lanes are sliced off in the wrapper.
    padded = (
        _pad2d(w1, d_in_p, h_p).astype(cd),
        _pad2d(b1, 1, h_p).astype(jnp.float32),
        _pad2d(w2, h_p, h_p).astype(cd),
        _pad2d(b2, 1, h_p).astype(jnp.float32),
        _pad2d(w3, h_p, d_out_p).astype(cd),
        _pad2d(b3, 1, d_out_p).astype(jnp.float32),
    )
    return padded, d_out


@functools.partial(jax.jit, static_argnames=("d_out", "batch_tile"))
def custom_net_forward(x, padded_params, *, d_out: int, batch_tile: int = 256):
    """x: (B, C, H, W) float32 (flattened inside, like torch's .view).

    padded_params: output of prepare_params(). Returns (B, d_out) float32.
    """
    w1_p, b1_p, w2_p, b2_p, w3_p, b3_p = padded_params
    B = x.shape[0]
    x2d = x.reshape(B, -1)                       # x.view(x.size(0), -1)
    d_in = x2d.shape[1]

    d_in_p, h_p = w1_p.shape
    h2_p = w2_p.shape[1]
    d_out_p = w3_p.shape[1]
    assert d_in <= d_in_p and h_p == h2_p and d_out <= d_out_p

    # --- batch tiling ---------------------------------------------------------
    # Balance tiles (minimize batch padding), round rows to 16 (bf16 packed
    # sublane pair), and use >=2 tiles when B is big enough so the "parallel"
    # axis can be sharded across both v7x TensorCores.
    n_want = max(_cdiv(B, batch_tile), 2 if B >= 32 else 1)
    tb = max(16, min(batch_tile, _round_up(_cdiv(B, n_want), 16)))
    n_tiles = _cdiv(B, tb)
    b_p = n_tiles * tb

    # x stays f32; the kernel casts on the VPU (no wrapper-side cast pass).
    x_p = _pad2d(x2d, b_p, d_in_p)

    # --- block specs: batch tiles stream, weights stay resident ---------------
    act_in_spec = pl.BlockSpec((tb, d_in_p), lambda i: (i, 0))
    act_out_spec = pl.BlockSpec((tb, d_out_p), lambda i: (i, 0))

    def resident(shape):
        # Constant index_map => single buffer is enough (no revisiting DMA).
        return pl.BlockSpec(shape, lambda i: (0, 0), pipeline_mode=pl.Buffered(1))

    # --- VMEM budget from actual footprint ------------------------------------
    w_item = jnp.dtype(w1_p.dtype).itemsize
    w_bytes = (w1_p.size + w2_p.size + w3_p.size) * w_item \
        + (b1_p.size + b2_p.size + b3_p.size) * 4
    act_bytes = 2 * tb * d_in_p * 4 + 2 * tb * d_out_p * 4      # double-buffered io
    live_bytes = tb * (2 * d_in_p + 2 * 4 * h_p + 2 * h_p + 4 * d_out_p)
    footprint = w_bytes + act_bytes + live_bytes
    vmem_limit = int(min(_VMEM_CAP - (2 << 20),
                         max(footprint + (4 << 20), 32 << 20)))

    flops = 2 * b_p * (d_in_p * h_p + h_p * h_p + h_p * d_out_p)
    bytes_accessed = (
        b_p * d_in_p * 4                                   # x in (f32)
        + (d_in_p * h_p + h_p * h_p + h_p * d_out_p) * w_item  # weights
        + (2 * h_p + d_out_p) * 4                          # biases (f32)
        + b_p * d_out_p * 4                                # output (f32)
    )

    out_p = pl.pallas_call(
        _mlp_kernel,
        out_shape=jax.ShapeDtypeStruct((b_p, d_out_p), jnp.float32),
        grid_spec=pltpu.PrefetchScalarGridSpec(
            num_scalar_prefetch=0,
            grid=(n_tiles,),
            in_specs=[
                act_in_spec,
                resident((d_in_p, h_p)), resident((1, h_p)),
                resident((h_p, h_p)), resident((1, h_p)),
                resident((h_p, d_out_p)), resident((1, d_out_p)),
            ],
            out_specs=act_out_spec,
        ),
        compiler_params=pltpu.CompilerParams(
            dimension_semantics=("parallel",),
            vmem_limit_bytes=vmem_limit,
        ),
        cost_estimate=pl.CostEstimate(
            flops=flops, transcendentals=0, bytes_accessed=bytes_accessed),
    )(x_p, w1_p, b1_p, w2_p, b2_p, w3_p, b3_p)

    # Slice padded batch rows / output lanes back off.
    return out_p[:B, :d_out]


def init_params(key, d_in, h1, h2, d_out):
    """Deterministic synthetic init. Weights stored as (fan_in, fan_out)."""
    ks = jax.random.split(key, 6)

    def lin(kw, kb, fan_in, fan_out):
        bound = 1.0 / jnp.sqrt(fan_in)
        w = jax.random.uniform(kw, (fan_in, fan_out), jnp.float32, -bound, bound)
        b = jax.random.uniform(kb, (1, fan_out), jnp.float32, -bound, bound)
        return w, b

    w1, b1 = lin(ks[0], ks[1], d_in, h1)
    w2, b2 = lin(ks[2], ks[3], h1, h2)
    w3, b3 = lin(ks[4], ks[5], h2, d_out)
    return (w1, b1, w2, b2, w3, b3)


def _ref_forward(x, params, use_bf16):
    """Pure-JAX reference with the same operand precision as the kernel."""
    w1, b1, w2, b2, w3, b3 = params
    cd = jnp.bfloat16 if use_bf16 else jnp.float32
    x2d = x.reshape(x.shape[0], -1)
    out1 = jnp.dot(x2d.astype(cd), w1.astype(cd),
                   preferred_element_type=jnp.float32) + b1
    out1 = jnp.maximum(out1, 0.0)
    out2 = jnp.dot(out1.astype(cd), w2.astype(cd),
                   preferred_element_type=jnp.float32) + b2
    out2 = jnp.maximum(out2, 0.0) + out1
    return jnp.dot(out2.astype(cd), w3.astype(cd),
                   preferred_element_type=jnp.float32) + b3


if __name__ == "__main__":
    key = jax.random.PRNGKey(0)
    k_x, k_p = jax.random.split(key)

    # Small shapes consistent with the module: image input (B, C, H, W)
    # flattened to input_dim = C*H*W; hidden_dim1 == hidden_dim2 (residual).
    B, C, H, W = 2, 3, 8, 8
    d_in = C * H * W          # 192 -> padded to 256 inside
    h1 = h2 = 128
    d_out = 10                # -> padded to 128 inside, sliced back

    x = jax.random.normal(k_x, (B, C, H, W), jnp.float32)
    params = init_params(k_p, d_in, h1, h2, d_out)

    # bf16 MXU path (default): weights padded/cast once, reused per call.
    padded_bf16, dout = prepare_params(params, use_bf16=True)
    y = jax.block_until_ready(custom_net_forward(x, padded_bf16, d_out=dout))
    ref = _ref_forward(x, params, use_bf16=True)
    assert y.shape == (B, d_out)
    assert jnp.allclose(y, ref, atol=1e-2, rtol=1e-2), (
        f"max abs err {jnp.max(jnp.abs(y - ref))}")

    # f32 path against an exact f32 reference.
    padded_f32, dout32 = prepare_params(params, use_bf16=False)
    y32 = jax.block_until_ready(custom_net_forward(x, padded_f32, d_out=dout32))
    ref32 = _ref_forward(x, params, use_bf16=False)
    assert jnp.allclose(y32, ref32, atol=1e-4, rtol=1e-4), (
        f"max abs err {jnp.max(jnp.abs(y32 - ref32))}")

    print("KERNEL_OK")
</pallas_src>

<mosaic_0001>
module attributes {stable_mosaic.version = 11 : i64} {
  func.func @_mlp_kernel(%arg0: i32, %arg1: memref<16x256xf32, #tpu.memory_space<vmem>>, %arg2: memref<256x128xbf16, #tpu.memory_space<vmem>>, %arg3: memref<1x128xf32, #tpu.memory_space<vmem>>, %arg4: memref<128x128xbf16, #tpu.memory_space<vmem>>, %arg5: memref<1x128xf32, #tpu.memory_space<vmem>>, %arg6: memref<128x128xbf16, #tpu.memory_space<vmem>>, %arg7: memref<1x128xf32, #tpu.memory_space<vmem>>, %arg8: memref<16x128xf32, #tpu.memory_space<vmem>>) attributes {dimension_semantics = [#tpu.dimension_semantics<parallel>], iteration_bounds = array<i64: 1>, scalar_prefetch = 0 : i64, scratch_operands = 0 : i64, tpu.core_type = #tpu.core_type<tc>, window_params = [{transform_indices = @transform_0, window_bounds = array<i64: 16, 256>}, {pipeline_mode = #tpu.pipeline_mode<synchronous>, transform_indices = @transform_1, window_bounds = array<i64: 256, 128>}, {pipeline_mode = #tpu.pipeline_mode<synchronous>, transform_indices = @transform_2, window_bounds = array<i64: 1, 128>}, {pipeline_mode = #tpu.pipeline_mode<synchronous>, transform_indices = @transform_3, window_bounds = array<i64: 128, 128>}, {pipeline_mode = #tpu.pipeline_mode<synchronous>, transform_indices = @transform_4, window_bounds = array<i64: 1, 128>}, {pipeline_mode = #tpu.pipeline_mode<synchronous>, transform_indices = @transform_5, window_bounds = array<i64: 128, 128>}, {pipeline_mode = #tpu.pipeline_mode<synchronous>, transform_indices = @transform_6, window_bounds = array<i64: 1, 128>}, {transform_indices = @transform_7, window_bounds = array<i64: 16, 128>}]} {
    %c0 = arith.constant 0 : index
    %c0_0 = arith.constant 0 : index
    %0 = vector.load %arg1[%c0, %c0_0] : memref<16x256xf32, #tpu.memory_space<vmem>>, vector<16x256xf32>
    %1 = arith.truncf %0 : vector<16x256xf32> to vector<16x256xbf16>
    %c0_1 = arith.constant 0 : index
    %c0_2 = arith.constant 0 : index
    %2 = vector.load %arg2[%c0_1, %c0_2] : memref<256x128xbf16, #tpu.memory_space<vmem>>, vector<256x128xbf16>
    %cst = arith.constant dense<0.000000e+00> : vector<16x128xf32>
    %3 = tpu.matmul %1, %2, %cst {dimension_numbers = #tpu.dot_dimension_numbers<[1], [0], [0], [1], [0, 0, 1, 1], [], []>} : vector<16x256xbf16>, vector<256x128xbf16>, vector<16x128xf32> -> vector<16x128xf32>
    %c0_3 = arith.constant 0 : index
    %c0_4 = arith.constant 0 : index
    %4 = vector.load %arg3[%c0_3, %c0_4] : memref<1x128xf32, #tpu.memory_space<vmem>>, vector<1x128xf32>
    %5 = vector.broadcast %4 : vector<1x128xf32> to vector<16x128xf32>
    %6 = arith.addf %3, %5 : vector<16x128xf32>
    %cst_5 = arith.constant 0.000000e+00 : f32
    %7 = vector.broadcast %cst_5 : f32 to vector<16x128xf32>
    %8 = arith.maximumf %6, %7 : vector<16x128xf32>
    %9 = arith.truncf %8 : vector<16x128xf32> to vector<16x128xbf16>
    %c0_6 = arith.constant 0 : index
    %c0_7 = arith.constant 0 : index
    %10 = vector.load %arg4[%c0_6, %c0_7] : memref<128x128xbf16, #tpu.memory_space<vmem>>, vector<128x128xbf16>
    %cst_8 = arith.constant dense<0.000000e+00> : vector<16x128xf32>
    %11 = tpu.matmul %9, %10, %cst_8 {dimension_numbers = #tpu.dot_dimension_numbers<[1], [0], [0], [1], [0, 0, 1, 1], [], []>} : vector<16x128xbf16>, vector<128x128xbf16>, vector<16x128xf32> -> vector<16x128xf32>
    %c0_9 = arith.constant 0 : index
    %c0_10 = arith.constant 0 : index
    %12 = vector.load %arg5[%c0_9, %c0_10] : memref<1x128xf32, #tpu.memory_space<vmem>>, vector<1x128xf32>
    %13 = vector.broadcast %12 : vector<1x128xf32> to vector<16x128xf32>
    %14 = arith.addf %11, %13 : vector<16x128xf32>
    %cst_11 = arith.constant 0.000000e+00 : f32
    %15 = vector.broadcast %cst_11 : f32 to vector<16x128xf32>
    %16 = arith.maximumf %14, %15 : vector<16x128xf32>
    %17 = arith.addf %16, %8 : vector<16x128xf32>
    %18 = arith.truncf %17 : vector<16x128xf32> to vector<16x128xbf16>
    %c0_12 = arith.constant 0 : index
    %c0_13 = arith.constant 0 : index
    %19 = vector.load %arg6[%c0_12, %c0_13] : memref<128x128xbf16, #tpu.memory_space<vmem>>, vector<128x128xbf16>
    %cst_14 = arith.constant dense<0.000000e+00> : vector<16x128xf32>
    %20 = tpu.matmul %18, %19, %cst_14 {dimension_numbers = #tpu.dot_dimension_numbers<[1], [0], [0], [1], [0, 0, 1, 1], [], []>} : vector<16x128xbf16>, vector<128x128xbf16>, vector<16x128xf32> -> vector<16x128xf32>
    %c0_15 = arith.constant 0 : index
    %c0_16 = arith.constant 0 : index
    %21 = vector.load %arg7[%c0_15, %c0_16] : memref<1x128xf32, #tpu.memory_space<vmem>>, vector<1x128xf32>
    %22 = vector.broadcast %21 : vector<1x128xf32> to vector<16x128xf32>
    %23 = arith.addf %20, %22 : vector<16x128xf32>
    %c0_17 = arith.constant 0 : index
    %c0_18 = arith.constant 0 : index
    %24 = vector.load %arg8[%c0_17, %c0_18] : memref<16x128xf32, #tpu.memory_space<vmem>>, vector<16x128xf32>
    tpu.vector_store %arg8[%c0_17, %c0_18], %23 {strides = array<i32>} : memref<16x128xf32, #tpu.memory_space<vmem>>, vector<16x128xf32>,
    return
  }
  func.func @transform_0(%arg0: i32) -> (i32, i32) {
    %c0_i32 = arith.constant 0 : i32
    %c0_i32_0 = arith.constant 0 : i32
    return %arg0, %c0_i32 : i32, i32
  }
  func.func @transform_1(%arg0: i32) -> (i32, i32) {
    %c0_i32 = arith.constant 0 : i32
    %c0_i32_0 = arith.constant 0 : i32
    %c0_i32_1 = arith.constant 0 : i32
    return %c0_i32, %c0_i32_0 : i32, i32
  }
  func.func @transform_2(%arg0: i32) -> (i32, i32) {
    %c0_i32 = arith.constant 0 : i32
    %c0_i32_0 = arith.constant 0 : i32
    %c0_i32_1 = arith.constant 0 : i32
    return %c0_i32, %c0_i32_0 : i32, i32
  }
  func.func @transform_3(%arg0: i32) -> (i32, i32) {
    %c0_i32 = arith.constant 0 : i32
    %c0_i32_0 = arith.constant 0 : i32
    %c0_i32_1 = arith.constant 0 : i32
    return %c0_i32, %c0_i32_0 : i32, i32
  }
  func.func @transform_4(%arg0: i32) -> (i32, i32) {
    %c0_i32 = arith.constant 0 : i32
    %c0_i32_0 = arith.constant 0 : i32
    %c0_i32_1 = arith.constant 0 : i32
    return %c0_i32, %c0_i32_0 : i32, i32
  }
  func.func @transform_5(%arg0: i32) -> (i32, i32) {
    %c0_i32 = arith.constant 0 : i32
    %c0_i32_0 = arith.constant 0 : i32
    %c0_i32_1 = arith.constant 0 : i32
    return %c0_i32, %c0_i32_0 : i32, i32
  }
  func.func @transform_6(%arg0: i32) -> (i32, i32) {
    %c0_i32 = arith.constant 0 : i32
    %c0_i32_0 = arith.constant 0 : i32
    %c0_i32_1 = arith.constant 0 : i32
    return %c0_i32, %c0_i32_0 : i32, i32
  }
  func.func @transform_7(%arg0: i32) -> (i32, i32) {
    %c0_i32 = arith.constant 0 : i32
    %c0_i32_0 = arith.constant 0 : i32
    return %arg0, %c0_i32 : i32, i32
  }
}

</mosaic_0001>

<bundles_post_ra>
// kernel: custom_net_forward.1
= control target key start
LH: loop header
LB: loop body
LE: loop exit
PB: predicated region body
PF: predicated region fallthrough
CT: control target
= control target key end

     0   :  { %12 = vsyncpa [#allocation3], 0  ;;  %s724_s0 = inlined_call_operand.vmem [shape: f32[16,256], index: 0, kind: input, shape index: {}]   ;;  %s725_s1 = inlined_call_operand.hbm [shape: bf16[256,128], index: 1, kind: input, shape index: {}]   ;;  %s726_s2 = inlined_call_operand.vmem [shape: f32[1,128], index: 2, kind: input, shape index: {}]   ;;  %s727_s3 = inlined_call_operand.vmem [shape: bf16[128,128], index: 3, kind: input, shape index: {}]   ;;  %s728_s4 = inlined_call_operand.vmem [shape: f32[1,128], index: 4, kind: input, shape index: {}]   ;;  %s729_s5 = inlined_call_operand.hbm [shape: bf16[128,128], index: 5, kind: input, shape index: {}]   ;;  %s730_s6 = inlined_call_operand.vmem [shape: f32[1,128], index: 6, kind: input, shape index: {}]   ;;  %s731_s7 = inlined_call_operand.vmem [shape: f32[16,128], index: 7, kind: output, shape index: {}]  }
   0x1   :  { %s20_s26 = sshll.u32 %s725_s1, 4  ;;  %s21_s26 = int_to_ptr.hbm [resolvable:$true] %s20_s26 }
   0x2   :  { %13 = vsyncpa [#allocation5], 0  ;;  %s623_s27 = smov [#allocation2]   ;;  %s39_s8 = sshll.u32 %s729_s5, 4  ;;  %s40_s8 = int_to_ptr.hbm [resolvable:$true] %s39_s8 }
   0x3   :  { %s22_s28 = sshll.u32 %s623_s27, 4  ;;  %s624_s9 = smov 64   ;;  %s23_s28 = int_to_ptr.vmem [resolvable:$true] %s22_s28 }
   0x4   :  { %s625_s10 = smov 4   ;;  %s626_s11 = smov [#allocation4]  }
   0x5   :  { %28 = dma.hbm_to_vmem [thread:$0]  %s21_s26, 2048, %s23_s28, [#allocation3], %s624_s9, %s624_s9, %s625_s10  }
   0x6   :  { %s41_s12 = sshll.u32 %s626_s11, 4  ;;  %s42_s12 = int_to_ptr.vmem [resolvable:$true] %s41_s12 }
   0x7   :  { %47 = dma.hbm_to_vmem [thread:$0]  %s40_s8, 1024, %s42_s12, [#allocation5], %s624_s9, %s624_s9, %s625_s10  }
   0x8   :  { %619 = dma.done.wait [#allocation3], 2048  }
   0x9   :  { %620 = vsyncadd [#allocation3], 4294965248 }
   0xa   :  { %621 = dma.done.wait [#allocation5], 1024  }
   0xb   :  { %622 = vsyncadd [#allocation5], 4294966272  ;;  %v539_v0 = vld [vmem:[#allocation2 + $0x38] sm:$0xff]  ;;  %v538_v2 = vld [vmem:[#allocation2 + $0x30] sm:$0xff] }
   0xc   :  { %v547_v1 = vld [vmem:[#allocation2 + $0x78] sm:$0xff]  ;;  %196 = vmatpush.bf16.msra.mxu0 %v539_v0  ;;  %v546_v3 = vld [vmem:[#allocation2 + $0x70] sm:$0xff]  ;;  %v537_v4 = vld [vmem:[#allocation2 + $0x28] sm:$0xff] }
   0xd   :  { %210 = vmatpush.bf16.msra.mxu1 %v547_v1  ;;  %v545_v5 = vld [vmem:[#allocation2 + $0x68] sm:$0xff]  ;;  %v555_v6 = vld [vmem:[%s727_s3 + $0x38] sm:$0xff]  ;;  %v554_v7 = vld [vmem:[%s727_s3 + $0x30] sm:$0xff] }
   0xe   :  { %295 = vmatpush.bf16.msra.mxu2 %v555_v6  ;;  %v536_v8 = vld [vmem:[#allocation2 + $0x20] sm:$0xff]  ;;  %v553_v10 = vld [vmem:[%s727_s3 + $0x28] sm:$0xff]  ;;  %v535_v11 = vld [vmem:[#allocation2 + $0x18] sm:$0xff] }
   0xf   :  { %v544_v9 = vld [vmem:[#allocation2 + $0x60] sm:$0xff]  ;;  %v543_v12 = vld [vmem:[#allocation2 + $0x58] sm:$0xff]  ;;  %v534_v14 = vld [vmem:[#allocation2 + $0x10] sm:$0xff] }
  0x10   :  { %197 = vmatpush.bf16.msra.mxu0 %v538_v2  ;;  %v552_v13 = vld [vmem:[%s727_s3 + $0x20] sm:$0xff]  ;;  %v542_v15 = vld [vmem:[#allocation2 + $0x50] sm:$0xff]  ;;  %v533_v16 = vld [vmem:[#allocation2 + $0x8] sm:$0xff] }
  0x11   :  { %211 = vmatpush.bf16.msra.mxu1 %v546_v3  ;;  %v541_v17 = vld [vmem:[#allocation2 + $0x48] sm:$0xff]  ;;  %v532_v18 = vld [vmem:[#allocation2] sm:$0xff]  ;;  %v60_v21 = vld [vmem:[%s724_s0 + $0x10] sm:$0xff] }
  0x12   :  { %296 = vmatpush.bf16.msra.mxu2 %v554_v7  ;;  %v540_v19 = vld [vmem:[#allocation2 + $0x40] sm:$0xff]  ;;  %v59_v22 = vld [vmem:[%s724_s0 + $0x8] sm:$0xff]  ;;  %v61_v23 = vld [vmem:[%s724_s0 + $0x18] sm:$0xff] }
  0x13   :  { %v58_v20 = vld [vmem:[%s724_s0] sm:$0xff]  ;;  %v63_v25 = vpack.c.bf16 %v61_v23, %v59_v22  ;;  %v551_v26 = vld [vmem:[%s727_s3 + $0x18] sm:$0xff]  ;;  %v550_v27 = vld [vmem:[%s727_s3 + $0x10] sm:$0xff] }
  0x14   :  { %198 = vmatpush.bf16.msra.mxu0 %v537_v4  ;;  %v62_v24 = vpack.c.bf16 %v60_v21, %v58_v20  ;;  %v549_v28 = vld [vmem:[%s727_s3 + $0x8] sm:$0xff]  ;;  %v548_v29 = vld [vmem:[%s727_s3] sm:$0xff]  ;;  %v563_v30 = vld [vmem:[#allocation4 + $0x38] sm:$0xff] }
  0x15   :  { %212 = vmatpush.bf16.msra.mxu1 %v545_v5  ;;  %382 = vmatpush.bf16.msra.mxu3 %v563_v30  ;;  %v562_v31 = vld [vmem:[#allocation4 + $0x30] sm:$0xff]  ;;  %v561_v32 = vld [vmem:[#allocation4 + $0x28] sm:$0xff]  ;;  %v560_v33 = vld [vmem:[#allocation4 + $0x20] sm:$0xff] }
  0x16   :  { %297 = vmatpush.bf16.msra.mxu2 %v553_v10  ;;  %v568_v36 = vld [vmem:[%s726_s2] ss:$0 sm:$0xff]  ;;  %v559_v46 = vld [vmem:[#allocation4 + $0x18] sm:$0xff]  ;;  %v558_v47 = vld [vmem:[#allocation4 + $0x10] sm:$0xff] }
  0x17   :  { %v557_v48 = vld [vmem:[#allocation4 + $0x8] sm:$0xff]  ;;  %v556_v49 = vld [vmem:[#allocation4] sm:$0xff] }
  0x18   :  { %199 = vmatpush.bf16.msra.mxu0 %v536_v8  ;;  %v569_v51 = vld [vmem:[%s728_s4] ss:$0 sm:$0xff] }
  0x19   :  { %213 = vmatpush.bf16.msra.mxu1 %v544_v9  ;;  %383 = vmatpush.bf16.msra.mxu3 %v562_v31  ;;  %v570_v60 = vld [vmem:[%s730_s6] ss:$0 sm:$0xff] }
  0x1a   :  { %298 = vmatpush.bf16.msra.mxu2 %v552_v13 }
  0x1c   :  { %200 = vmatpush.bf16.msra.mxu0 %v535_v11 }
  0x1d   :  { %214 = vmatpush.bf16.msra.mxu1 %v543_v12  ;;  %384 = vmatpush.bf16.msra.mxu3 %v561_v32 }
  0x1e   :  { %299 = vmatpush.bf16.msra.mxu2 %v551_v26 }
  0x20   :  { %201 = vmatpush.bf16.msra.mxu0 %v534_v14 }
  0x21   :  { %215 = vmatpush.bf16.msra.mxu1 %v542_v15  ;;  %385 = vmatpush.bf16.msra.mxu3 %v560_v33 }
  0x22   :  { %300 = vmatpush.bf16.msra.mxu2 %v550_v27 }
  0x24   :  { %202 = vmatpush.bf16.msra.mxu0 %v533_v16 }
  0x25   :  { %216 = vmatpush.bf16.msra.mxu1 %v541_v17  ;;  %386 = vmatpush.bf16.msra.mxu3 %v559_v46 }
  0x26   :  { %301 = vmatpush.bf16.msra.mxu2 %v549_v28 }
  0x28   :  { %203 = vmatpush.bf16.msra.mxu0 %v532_v18 }
  0x29   :  { %217 = vmatpush.bf16.msra.mxu1 %v540_v19  ;;  %387 = vmatpush.bf16.msra.mxu3 %v558_v47 }
  0x2a   :  { %302 = vmatpush.bf16.msra.mxu2 %v548_v29 }
  0x2b   :  { %204 = vmatmul.bf16.vlgmr.msra.gmra.mxu0 %v62_v24 }
  0x2c   :  { %218 = vmatmul.bf16.vlgmr.msra.gmra.mxu1 %v63_v25 }
  0x2d   :  { %388 = vmatpush.bf16.msra.mxu3 %v557_v48 }
  0x31   :  { %389 = vmatpush.bf16.msra.mxu3 %v556_v49 }
  0xa8   :  { %v205_v34 = vpop.f32.mrf.mxu0 }
  0xa9   :  { %v219_v35 = vpop.f32.mrf.mxu1  ;;  %v206_v37 = vadd.f32 %v568_v36, %v205_v34 }
  0xab   :  { %v220_v39 = vadd.f32 %v219_v35, %v206_v37 }
  0xad   :  { %v224_v43 = vmax.f32 %v220_v39, 0.0 }
  0xb0   :  { %v207_v38 = vpop.f32.mrf.mxu0 }
  0xb1   :  { %v208_v40 = vadd.f32 %v568_v36, %v207_v38  ;;  %v221_v41 = vpop.f32.mrf.mxu1 }
  0xb3   :  { %v222_v42 = vadd.f32 %v221_v41, %v208_v40 }
  0xb5   :  { %v225_v44 = vmax.f32 %v222_v42, 0.0 }
  0xb7   :  { %v226_v45 = vpack.c.bf16 %v225_v44, %v224_v43 }
  0xb9   :  { %303 = vmatmul.bf16.vlgmr.msra.gmra.mxu2 %v226_v45 }
 0x13c   :  { %v304_v50 = vpop.f32.mrf.mxu2 }
 0x13d   :  { %v305_v52 = vadd.f32 %v569_v51, %v304_v50 }
 0x13f   :  { %v309_v54 = vmax.f32 %v305_v52, 0.0 }
 0x141   :  { %v311_v57 = vadd.f32 %v309_v54, %v224_v43 }
 0x144   :  { %v306_v53 = vpop.f32.mrf.mxu2 }
 0x145   :  { %v307_v55 = vadd.f32 %v569_v51, %v306_v53 }
 0x147   :  { %v310_v56 = vmax.f32 %v307_v55, 0.0 }
 0x149   :  { %v312_v58 = vadd.f32 %v310_v56, %v225_v44 }
 0x14b   :  { %v313_v59 = vpack.c.bf16 %v312_v58, %v311_v57 }
 0x14d   :  { %390 = vmatmul.bf16.vlgmr.msra.gmra.mxu3 %v313_v59 }
 0x1d0   :  { %v391_v61 = vpop.f32.mrf.mxu3 }
 0x1d1   :  { %v392_v62 = vadd.f32 %v570_v60, %v391_v61 }
 0x1d3   :  { %396 = vst [vmem:[%s731_s7] sm:$0xff] %v392_v62 }
 0x1d8   :  { %v393_v63 = vpop.f32.mrf.mxu3 }
 0x1d9   :  { %v394_v0 = vadd.f32 %v570_v60, %v393_v63 }
 0x1db   :  { %397 = vst [vmem:[%s731_s7 + $0x8] sm:$0xff] %v394_v0 }
 0x1dc   :  { %402 = vsyncpa [#allocation3], 1 }
 0x1dd   :  { %403 = vsyncpa [#allocation5], 1 }

</bundles_post_ra>
